<compile_context>
chip_gen: v7x
topology: tpu7x:2x2x1
jax: 0.10.0
libtpu: 0.0.40
codegen_flags: <defaults>
</compile_context>

<pallas_src>
import jax
import jax.numpy as jnp
from jax.experimental import pallas as pl
from jax.experimental.pallas import tpu as pltpu

SUBLANE = 8  # f32 sublane count


def _round_up(x, m):
    return ((x + m - 1) // m) * m


def _choose_tm(b_pad, block_m):
    """Largest multiple of 8 that divides b_pad, capped at block_m (and at
    b_pad//2 when there are >= 2 tiles worth of rows, so v7x gets >= 2 grid
    steps to shard across its two TensorCores)."""
    block_m = max(SUBLANE, _round_up(block_m, SUBLANE))
    cap = min(block_m, b_pad)
    if b_pad >= 2 * SUBLANE:
        cap = min(cap, b_pad // 2)
    cap = max(SUBLANE, (cap // SUBLANE) * SUBLANE)
    units = b_pad // SUBLANE
    for d in range(cap // SUBLANE, 0, -1):
        if units % d == 0:
            return d * SUBLANE
    return SUBLANE


def critic_dqn_kernel(x_ref, w1_ref, b1_ref, w2_ref, b2_ref, q_ref):
    # Cast the streamed activations to the MXU operand dtype in-kernel (VPU work
    # hidden under the DMA shadow); accumulate in f32.
    x = x_ref[...].astype(w1_ref.dtype)
    h = jnp.dot(x, w1_ref[...], preferred_element_type=jnp.float32)
    # f32 epilogue (bias + ReLU) on the VPU — v5e-safe, f32 accuracy.
    h = jnp.maximum(h + b1_ref[...], 0.0)
    # q head at its real width; the narrow masked store is trivial vs. the
    # writeback saved by not lane-padding the output.
    q = jnp.dot(h.astype(w2_ref.dtype), w2_ref[...],
                preferred_element_type=jnp.float32)
    q_ref[...] = (q + b2_ref[...]).astype(q_ref.dtype)


def reference_forward(x, w1, b1, w2, b2):
    h = jnp.maximum(x @ w1 + b1.reshape(1, -1), 0.0)
    return h @ w2 + b2.reshape(1, -1)


def critic_dqn_forward(x, w1, b1, w2, b2, *, block_m=1024, mxu_dtype=jnp.bfloat16,
                       min_pallas_batch=256, force_pallas=False):
    """Fused CriticDQN forward: relu(x @ w1 + b1) @ w2 + b2.

    x : (B, state_dim) f32
    w1: (state_dim, hidden) f32     b1: (hidden,) or (1, hidden) f32
    w2: (hidden, action_dim) f32    b2: (action_dim,) or (1, action_dim) f32
    Returns (B, action_dim) f32.
    """
    B, state_dim = x.shape
    hidden = w1.shape[1]
    action_dim = w2.shape[1]

    b1 = jnp.asarray(b1, jnp.float32).reshape(1, hidden)
    b2 = jnp.asarray(b2, jnp.float32).reshape(1, action_dim)

    # Tiny acting/inference batches: pallas_call launch + pipeline prime
    # dominates; a single fused XLA kernel wins there.
    if B < min_pallas_batch and not force_pallas:
        return reference_forward(x, w1, b1, w2, b2)

    # Only tail-pad (<= 7 rows) when B is not already a multiple of 8.
    b_pad = _round_up(B, SUBLANE)
    x_in = x if b_pad == B else jnp.pad(x, ((0, b_pad - B), (0, 0)))

    tm = _choose_tm(b_pad, block_m)
    grid = (b_pad // tm,)

    # Resident weights: cast once outside the grid, fetched once (constant map).
    w1_in = w1.astype(mxu_dtype)
    w2_in = w2.astype(mxu_dtype)

    q = pl.pallas_call(
        critic_dqn_kernel,
        out_shape=jax.ShapeDtypeStruct((b_pad, action_dim), jnp.float32),
        grid=grid,
        in_specs=[
            pl.BlockSpec((tm, state_dim), lambda i: (i, 0)),      # streamed batch tiles
            pl.BlockSpec((state_dim, hidden), lambda i: (0, 0)),  # resident weights
            pl.BlockSpec((1, hidden), lambda i: (0, 0)),
            pl.BlockSpec((hidden, action_dim), lambda i: (0, 0)),
            pl.BlockSpec((1, action_dim), lambda i: (0, 0)),
        ],
        out_specs=pl.BlockSpec((tm, action_dim), lambda i: (i, 0)),
        compiler_params=pltpu.CompilerParams(
            dimension_semantics=("parallel",),    # batch tiles are independent
            vmem_limit_bytes=32 * 1024 * 1024,    # safe headroom on every gen incl. v7x
        ),
    )(x_in, w1_in, b1, w2_in, b2)

    # NOTE: padded tail rows hold relu(b1)@w2+b2 garbage; never consume q unsliced.
    return q[:B] if b_pad != B else q


if __name__ == "__main__":
    # Shapes consistent with the module: state_dim=16, hidden_dim=32, action_dim=4.
    state_dim, hidden_dim, action_dim = 16, 32, 4

    key = jax.random.PRNGKey(0)
    kx, k1, kb1, k2, kb2, kx_big = jax.random.split(key, 6)

    # PyTorch Linear-style init: uniform(-1/sqrt(in), 1/sqrt(in)).
    bound1 = 1.0 / jnp.sqrt(jnp.float32(state_dim))
    bound2 = 1.0 / jnp.sqrt(jnp.float32(hidden_dim))
    w1 = jax.random.uniform(k1, (state_dim, hidden_dim), jnp.float32, -bound1, bound1)
    b1 = jax.random.uniform(kb1, (1, hidden_dim), jnp.float32, -bound1, bound1)
    w2 = jax.random.uniform(k2, (hidden_dim, action_dim), jnp.float32, -bound2, bound2)
    b2 = jax.random.uniform(kb2, (1, action_dim), jnp.float32, -bound2, bound2)

    # Case 1: demo-sized acting batch, forced through the Pallas kernel to
    # exercise it end-to-end.
    batch = 2
    x = jax.random.normal(kx, (batch, state_dim), jnp.float32)
    q = jax.block_until_ready(critic_dqn_forward(x, w1, b1, w2, b2, force_pallas=True))
    q_ref = reference_forward(x, w1, b1, w2, b2)
    assert q.shape == (batch, action_dim)
    assert jnp.allclose(q, q_ref, atol=2e-2, rtol=2e-2), "Pallas output mismatch (small batch)"

    # Case 2: training-sized replay batch through the default (Pallas) path,
    # with >= 2 grid steps so both v7x TensorCores are used.
    big_batch = 1024
    x_big = jax.random.normal(kx_big, (big_batch, state_dim), jnp.float32)
    q_big = jax.block_until_ready(critic_dqn_forward(x_big, w1, b1, w2, b2))
    q_big_ref = reference_forward(x_big, w1, b1, w2, b2)
    assert q_big.shape == (big_batch, action_dim)
    assert jnp.allclose(q_big, q_big_ref, atol=2e-2, rtol=2e-2), "Pallas output mismatch (large batch)"

    print("KERNEL_OK")
</pallas_src>

<mosaic_0001>
module attributes {stable_mosaic.version = 11 : i64} {
  func.func @critic_dqn_kernel(%arg0: i32, %arg1: memref<8x16xf32, #tpu.memory_space<vmem>>, %arg2: memref<16x32xbf16, #tpu.memory_space<vmem>>, %arg3: memref<1x32xf32, #tpu.memory_space<vmem>>, %arg4: memref<32x4xbf16, #tpu.memory_space<vmem>>, %arg5: memref<1x4xf32, #tpu.memory_space<vmem>>, %arg6: memref<8x4xf32, #tpu.memory_space<vmem>>) attributes {dimension_semantics = [#tpu.dimension_semantics<parallel>], iteration_bounds = array<i64: 1>, scalar_prefetch = 0 : i64, scratch_operands = 0 : i64, tpu.core_type = #tpu.core_type<tc>, window_params = [{transform_indices = @transform_0, window_bounds = array<i64: 8, 16>}, {pipeline_mode = #tpu.pipeline_mode<synchronous>, transform_indices = @transform_1, window_bounds = array<i64: 16, 32>}, {pipeline_mode = #tpu.pipeline_mode<synchronous>, transform_indices = @transform_2, window_bounds = array<i64: 1, 32>}, {pipeline_mode = #tpu.pipeline_mode<synchronous>, transform_indices = @transform_3, window_bounds = array<i64: 32, 4>}, {pipeline_mode = #tpu.pipeline_mode<synchronous>, transform_indices = @transform_4, window_bounds = array<i64: 1, 4>}, {transform_indices = @transform_5, window_bounds = array<i64: 8, 4>}]} {
    %c0 = arith.constant 0 : index
    %c0_0 = arith.constant 0 : index
    %0 = vector.load %arg1[%c0, %c0_0] : memref<8x16xf32, #tpu.memory_space<vmem>>, vector<8x16xf32>
    %1 = arith.truncf %0 : vector<8x16xf32> to vector<8x16xbf16>
    %c0_1 = arith.constant 0 : index
    %c0_2 = arith.constant 0 : index
    %2 = vector.load %arg2[%c0_1, %c0_2] : memref<16x32xbf16, #tpu.memory_space<vmem>>, vector<16x32xbf16>
    %cst = arith.constant dense<0.000000e+00> : vector<8x32xf32>
    %3 = tpu.matmul %1, %2, %cst {dimension_numbers = #tpu.dot_dimension_numbers<[1], [0], [0], [1], [0, 0, 1, 1], [], []>} : vector<8x16xbf16>, vector<16x32xbf16>, vector<8x32xf32> -> vector<8x32xf32>
    %c0_3 = arith.constant 0 : index
    %c0_4 = arith.constant 0 : index
    %4 = vector.load %arg3[%c0_3, %c0_4] : memref<1x32xf32, #tpu.memory_space<vmem>>, vector<1x32xf32>
    %5 = vector.broadcast %4 : vector<1x32xf32> to vector<8x32xf32>
    %6 = arith.addf %3, %5 : vector<8x32xf32>
    %cst_5 = arith.constant 0.000000e+00 : f32
    %7 = vector.broadcast %cst_5 : f32 to vector<8x32xf32>
    %8 = arith.maximumf %6, %7 : vector<8x32xf32>
    %9 = arith.truncf %8 : vector<8x32xf32> to vector<8x32xbf16>
    %c0_6 = arith.constant 0 : index
    %c0_7 = arith.constant 0 : index
    %10 = vector.load %arg4[%c0_6, %c0_7] : memref<32x4xbf16, #tpu.memory_space<vmem>>, vector<32x4xbf16>
    %cst_8 = arith.constant dense<0.000000e+00> : vector<8x4xf32>
    %11 = tpu.matmul %9, %10, %cst_8 {dimension_numbers = #tpu.dot_dimension_numbers<[1], [0], [0], [1], [0, 0, 1, 1], [], []>} : vector<8x32xbf16>, vector<32x4xbf16>, vector<8x4xf32> -> vector<8x4xf32>
    %c0_9 = arith.constant 0 : index
    %c0_10 = arith.constant 0 : index
    %12 = vector.load %arg5[%c0_9, %c0_10] : memref<1x4xf32, #tpu.memory_space<vmem>>, vector<1x4xf32>
    %13 = vector.broadcast %12 : vector<1x4xf32> to vector<8x4xf32>
    %14 = arith.addf %11, %13 : vector<8x4xf32>
    %c0_11 = arith.constant 0 : index
    %c0_12 = arith.constant 0 : index
    %15 = vector.load %arg6[%c0_11, %c0_12] : memref<8x4xf32, #tpu.memory_space<vmem>>, vector<8x4xf32>
    tpu.vector_store %arg6[%c0_11, %c0_12], %14 {strides = array<i32>} : memref<8x4xf32, #tpu.memory_space<vmem>>, vector<8x4xf32>,
    return
  }
  func.func @transform_0(%arg0: i32) -> (i32, i32) {
    %c0_i32 = arith.constant 0 : i32
    %c0_i32_0 = arith.constant 0 : i32
    return %arg0, %c0_i32 : i32, i32
  }
  func.func @transform_1(%arg0: i32) -> (i32, i32) {
    %c0_i32 = arith.constant 0 : i32
    %c0_i32_0 = arith.constant 0 : i32
    %c0_i32_1 = arith.constant 0 : i32
    return %c0_i32, %c0_i32_0 : i32, i32
  }
  func.func @transform_2(%arg0: i32) -> (i32, i32) {
    %c0_i32 = arith.constant 0 : i32
    %c0_i32_0 = arith.constant 0 : i32
    %c0_i32_1 = arith.constant 0 : i32
    return %c0_i32, %c0_i32_0 : i32, i32
  }
  func.func @transform_3(%arg0: i32) -> (i32, i32) {
    %c0_i32 = arith.constant 0 : i32
    %c0_i32_0 = arith.constant 0 : i32
    %c0_i32_1 = arith.constant 0 : i32
    return %c0_i32, %c0_i32_0 : i32, i32
  }
  func.func @transform_4(%arg0: i32) -> (i32, i32) {
    %c0_i32 = arith.constant 0 : i32
    %c0_i32_0 = arith.constant 0 : i32
    %c0_i32_1 = arith.constant 0 : i32
    return %c0_i32, %c0_i32_0 : i32, i32
  }
  func.func @transform_5(%arg0: i32) -> (i32, i32) {
    %c0_i32 = arith.constant 0 : i32
    %c0_i32_0 = arith.constant 0 : i32
    return %arg0, %c0_i32 : i32, i32
  }
}

</mosaic_0001>

<bundles_post_ra>
// kernel: tpu_custom_call.1
= control target key start
LH: loop header
LB: loop body
LE: loop exit
PB: predicated region body
PF: predicated region fallthrough
CT: control target
= control target key end

     0   :  { %v188_v0 = vmov 0.0   ;;  %vm189_vm0 = vmmov 0   ;;  %vm38_vm1 = vcmask 130048   ;;  %vm107_vm2 = vcmask 261120   ;;  %s241_s1 = inlined_call_operand.vmem [shape: bf16[16,32], index: 1, kind: input, shape index: {}]   ;;  %s242_s0 = inlined_call_operand.vmem [shape: f32[8,16], index: 0, kind: input, shape index: {}]   ;;  %s243_s3 = inlined_call_operand.vmem [shape: bf16[32,4], index: 3, kind: input, shape index: {}]   ;;  %s244_s2 = inlined_call_operand.vmem [shape: f32[1,32], index: 2, kind: input, shape index: {}]   ;;  %s245_s4 = inlined_call_operand.vmem [shape: f32[1,4], index: 4, kind: input, shape index: {}]   ;;  %s246_s5 = inlined_call_operand.vmem [shape: f32[8,4], index: 5, kind: output, shape index: {}]  }
   0x1   :  { %169 = vmatprep.subr.bf16.mxu0 %v188_v0  ;;  %v185_v1 = vld [vmem:[%s241_s1] sm:$0xff]   ;;  %171 = vmatprep.mubr.msk.bf16.mxu0 %vm189_vm0, %v188_v0  ;;  %v187_v5 = vld [vmem:[%s243_s3 + $0x8] sm:$0xff]   ;;  %vm151_vm3 = vcmask 31744  }
   0x2   :  { %v21_v2 = vld [vmem:[%s242_s0] sm:$0xff]  ;;  %175 = vmatprep.subr.bf16.mxu1 %v188_v0  ;;  %179 = vmatprep.mubr.msk.bf16.mxu1 %vm189_vm0, %v188_v0 }
   0x3   :  { %170 = vmatpush3.bf16.msra.mxu0 %v185_v1  ;;  %v22_v3 = vpack.c.bf16 %v21_v2, %v21_v2  ;;  %v186_v4 = vld [vmem:[%s243_s3] sm:$0xff]  }
   0x4   :  { %176 = vmatpush3.bf16.msra.mxu1 %v186_v4  ;;  %v157_v6 = vld [vmem:[%s244_s2] ss:$0 sm:$0xff] }
   0x5   :  { %177 = vmatprep.subr.bf16.mxu1 %v188_v0  ;;  %v160_v14 = vld [vmem:[%s245_s4] ss:$0 sm:$0xff] }
   0x6   :  { %172 = vmatmul.mubr.msk.bf16.vlgmr.msra.gmra.mrb[0].mxu0 %vm38_vm1, %v22_v3 }
   0x8   :  { %178 = vmatpush3.bf16.msra.mxu1 %v187_v5 }
  0xd9   :  { %v76_v7 = vpop.f32.mrb[0].mxu0 }
  0xda   :  { %v77_v8 = vadd.f32 %v157_v6, %v76_v7  ;;  %v173_v9 = vpop.f32.mrb[1].mxu0 }
  0xdb   :  { %v79_v10 = vpop.f32.mrb[2].mxu0 }
  0xdc   :  { %v82_v11 = vmax.f32 %v77_v8, 0.0  ;;  %v174_v12 = vpop.f32.mrb[3].mxu0 }
  0xde   :  { %v83_v13 = vpack.c.bf16 %v82_v11, %v82_v11 }
  0xe0   :  { %180 = vmatmul.mubr.msk.bf16.vlgmr.msra.gmra.mrb[0].mxu1 %vm107_vm2, %v83_v13 }
 0x1b3   :  { %v145_v15 = vpop.f32.mrb[0].mxu1 }
 0x1b4   :  { %v146_v16 = vadd.f32 %v160_v14, %v145_v15  ;;  %v181_v17 = vpop.f32.mrb[1].mxu1 }
 0x1b5   :  { %v148_v18 = vpop.f32.mrb[2].mxu1 }
 0x1b6   :  { %152 = vst.msk [vmem:[%s246_s5] sm:$0xff] %vm151_vm3, %v146_v16  ;;  %v182_v19 = vpop.f32.mrb[3].mxu1 }

</bundles_post_ra>
